<compile_context>
chip_gen: v7x
topology: tpu7x:2x2x1
jax: 0.10.0
libtpu: 0.0.40
codegen_flags: <defaults>
</compile_context>

<pallas_src>
import jax
import jax.numpy as jnp
from jax.experimental import pallas as pl
from jax.experimental.pallas import tpu as pltpu


def mlp_wave_kernel(xT_ref, w1_ref, b1_ref, w2_ref, b2_ref, oT_ref):
    # xT: (in, TB)   w1: (hidden, in)   b1: (hidden, 1)
    # w2: (out, hidden)   b2: (out, 1)  oT: (out, TB)
    xT = xT_ref[...]
    h = jnp.dot(w1_ref[...], xT, preferred_element_type=jnp.float32) + b1_ref[...]
    # sigmoid: exp on the EUP, approximate reciprocal also on the EUP (vrcp).
    h = pl.reciprocal(1.0 + jnp.exp(-h), approx=True)
    y = jnp.dot(w2_ref[...], h, preferred_element_type=jnp.float32) + b2_ref[...]
    oT_ref[...] = y.astype(oT_ref.dtype)


def _round_up(n, m):
    return ((n + m - 1) // m) * m


def mlp_wave_forward(x, w1, b1, w2, b2, *, block_batch=512):
    """Forward pass of MLP_wave.

    x : (B, in_features)              -- PyTorch activation layout
    w1: (hidden, in_features)         -- nn.Linear weight layout (out, in)
    b1: (hidden, 1)
    w2: (out_features, hidden)
    b2: (out_features, 1)
    returns (B, out_features)
    """
    B, in_features = x.shape
    hidden = w1.shape[0]
    out_features = w2.shape[0]

    # Batch tile: a multiple of the 128-lane width, clamped for tiny batches.
    tb = min(block_batch, _round_up(B, 128))
    Bp = _round_up(B, tb)

    # Feature-major: batch on lanes.  (Layout plumbing only -- in a real pipeline
    # produce x in this layout upstream to avoid the extra transpose pass.)
    xT = jnp.transpose(x)                            # (in, B)
    if Bp != B:
        xT = jnp.pad(xT, ((0, 0), (0, Bp - B)))      # (in, Bp)

    grid = (Bp // tb,)

    yT = pl.pallas_call(
        mlp_wave_kernel,
        out_shape=jax.ShapeDtypeStruct((out_features, Bp), x.dtype),
        grid_spec=pltpu.PrefetchScalarGridSpec(
            num_scalar_prefetch=0,
            grid=grid,
            in_specs=[
                # x tile streams along the batch grid axis (double-buffered DMA).
                pl.BlockSpec((in_features, tb), lambda i: (0, i)),
                # Weights / biases: constant index maps -> stay VMEM-resident.
                pl.BlockSpec((hidden, in_features), lambda i: (0, 0)),
                pl.BlockSpec((hidden, 1), lambda i: (0, 0)),
                pl.BlockSpec((out_features, hidden), lambda i: (0, 0)),
                pl.BlockSpec((out_features, 1), lambda i: (0, 0)),
            ],
            # Lane-dense (out, TB) output slab -> unmasked full-width stores.
            out_specs=pl.BlockSpec((out_features, tb), lambda i: (0, i)),
        ),
        compiler_params=pltpu.CompilerParams(
            dimension_semantics=("parallel",),       # batch tiles are independent
            vmem_limit_bytes=32 * 1024 * 1024,       # explicit; tiles use <100 KiB
        ),
    )(xT, w1, b1, w2, b2)

    return jnp.transpose(yT[:, :B])                  # (B, out_features)


def init_params(key, input_size=9, hidden_layer_size=10, output_size=1,
                dtype=jnp.float32):
    """Deterministic params in nn.Linear's (out, in) weight layout; biases (out, 1)."""
    k1, k2, k3, k4 = jax.random.split(key, 4)
    lim1 = 1.0 / float(input_size) ** 0.5
    lim2 = 1.0 / float(hidden_layer_size) ** 0.5
    w1 = jax.random.uniform(k1, (hidden_layer_size, input_size), dtype, -lim1, lim1)
    b1 = jax.random.uniform(k2, (hidden_layer_size, 1), dtype, -lim1, lim1)
    w2 = jax.random.uniform(k3, (output_size, hidden_layer_size), dtype, -lim2, lim2)
    b2 = jax.random.uniform(k4, (output_size, 1), dtype, -lim2, lim2)
    return w1, b1, w2, b2


def reference_forward(x, w1, b1, w2, b2):
    h = jax.nn.sigmoid(x @ w1.T + b1[:, 0])
    return h @ w2.T + b2[:, 0]


if __name__ == "__main__":
    key = jax.random.PRNGKey(0)
    kx, kp = jax.random.split(key)

    input_size, hidden, output_size = 9, 10, 1
    w1, b1, w2, b2 = init_params(kp, input_size, hidden, output_size)

    # Main case: batch large enough to exercise the batch grid (4 tiles of 256).
    batch = 1024
    x = jax.random.normal(kx, (batch, input_size), jnp.float32)
    out = jax.block_until_ready(mlp_wave_forward(x, w1, b1, w2, b2, block_batch=256))
    ref = reference_forward(x, w1, b1, w2, b2)
    assert out.shape == (batch, output_size)
    # approx-reciprocal sigmoid -> allow small slack vs. the exact reference.
    assert jnp.allclose(out, ref, atol=2e-3, rtol=2e-3)

    # Tiny-batch case: exercises batch padding / tile clamping (8 -> one 128-wide tile).
    x_small = jax.random.normal(kx, (8, input_size), jnp.float32)
    out_small = jax.block_until_ready(mlp_wave_forward(x_small, w1, b1, w2, b2))
    ref_small = reference_forward(x_small, w1, b1, w2, b2)
    assert out_small.shape == (8, output_size)
    assert jnp.allclose(out_small, ref_small, atol=2e-3, rtol=2e-3)

    print("KERNEL_OK")
</pallas_src>

<mosaic_0001>
module attributes {stable_mosaic.version = 11 : i64} {
  func.func @mlp_wave_kernel(%arg0: i32, %arg1: memref<9x256xf32, #tpu.memory_space<vmem>>, %arg2: memref<10x9xf32, #tpu.memory_space<vmem>>, %arg3: memref<10x1xf32, #tpu.memory_space<vmem>>, %arg4: memref<1x10xf32, #tpu.memory_space<vmem>>, %arg5: memref<1x1xf32, #tpu.memory_space<vmem>>, %arg6: memref<1x256xf32, #tpu.memory_space<vmem>>) attributes {dimension_semantics = [#tpu.dimension_semantics<parallel>], iteration_bounds = array<i64: 4>, scalar_prefetch = 0 : i64, scratch_operands = 0 : i64, tpu.core_type = #tpu.core_type<tc>, window_params = [{transform_indices = @transform_0, window_bounds = array<i64: 9, 256>}, {pipeline_mode = #tpu.pipeline_mode<synchronous>, transform_indices = @transform_1, window_bounds = array<i64: 10, 9>}, {pipeline_mode = #tpu.pipeline_mode<synchronous>, transform_indices = @transform_2, window_bounds = array<i64: 10, 1>}, {pipeline_mode = #tpu.pipeline_mode<synchronous>, transform_indices = @transform_3, window_bounds = array<i64: 1, 10>}, {pipeline_mode = #tpu.pipeline_mode<synchronous>, transform_indices = @transform_4, window_bounds = array<i64: 1, 1>}, {transform_indices = @transform_5, window_bounds = array<i64: 1, 256>}]} {
    %c0 = arith.constant 0 : index
    %c0_0 = arith.constant 0 : index
    %0 = vector.load %arg1[%c0, %c0_0] : memref<9x256xf32, #tpu.memory_space<vmem>>, vector<9x256xf32>
    %c0_1 = arith.constant 0 : index
    %c0_2 = arith.constant 0 : index
    %1 = vector.load %arg2[%c0_1, %c0_2] : memref<10x9xf32, #tpu.memory_space<vmem>>, vector<10x9xf32>
    %cst = arith.constant dense<0.000000e+00> : vector<10x256xf32>
    %2 = tpu.matmul %1, %0, %cst {dimension_numbers = #tpu.dot_dimension_numbers<[1], [0], [0], [1], [0, 0, 1, 1], [], []>} : vector<10x9xf32>, vector<9x256xf32>, vector<10x256xf32> -> vector<10x256xf32>
    %c0_3 = arith.constant 0 : index
    %c0_4 = arith.constant 0 : index
    %3 = vector.load %arg3[%c0_3, %c0_4] : memref<10x1xf32, #tpu.memory_space<vmem>>, vector<10x1xf32>
    %4 = vector.broadcast %3 : vector<10x1xf32> to vector<10x256xf32>
    %5 = arith.addf %2, %4 : vector<10x256xf32>
    %cst_5 = arith.constant 0.000000e+00 : f32
    %6 = vector.broadcast %cst_5 : f32 to vector<10x256xf32>
    %7 = arith.subf %6, %5 : vector<10x256xf32>
    %8 = math.exp %7 : vector<10x256xf32>
    %cst_6 = arith.constant 1.000000e+00 : f32
    %9 = vector.broadcast %cst_6 : f32 to vector<10x256xf32>
    %10 = arith.addf %9, %8 : vector<10x256xf32>
    %11 = tpu.reciprocal %10 {approx = true} : vector<10x256xf32> -> vector<10x256xf32>
    %c0_7 = arith.constant 0 : index
    %c0_8 = arith.constant 0 : index
    %12 = vector.load %arg4[%c0_7, %c0_8] : memref<1x10xf32, #tpu.memory_space<vmem>>, vector<1x10xf32>
    %cst_9 = arith.constant dense<0.000000e+00> : vector<1x256xf32>
    %13 = tpu.matmul %12, %11, %cst_9 {dimension_numbers = #tpu.dot_dimension_numbers<[1], [0], [0], [1], [0, 0, 1, 1], [], []>} : vector<1x10xf32>, vector<10x256xf32>, vector<1x256xf32> -> vector<1x256xf32>
    %c0_10 = arith.constant 0 : index
    %c0_11 = arith.constant 0 : index
    %14 = vector.load %arg5[%c0_10, %c0_11] : memref<1x1xf32, #tpu.memory_space<vmem>>, vector<1x1xf32>
    %15 = vector.broadcast %14 : vector<1x1xf32> to vector<1x256xf32>
    %16 = arith.addf %13, %15 : vector<1x256xf32>
    %c0_12 = arith.constant 0 : index
    %c0_13 = arith.constant 0 : index
    %17 = vector.load %arg6[%c0_12, %c0_13] : memref<1x256xf32, #tpu.memory_space<vmem>>, vector<1x256xf32>
    tpu.vector_store %arg6[%c0_12, %c0_13], %16 {strides = array<i32>} : memref<1x256xf32, #tpu.memory_space<vmem>>, vector<1x256xf32>,
    return
  }
  func.func @transform_0(%arg0: i32) -> (i32, i32) {
    %c0_i32 = arith.constant 0 : i32
    %c0_i32_0 = arith.constant 0 : i32
    return %c0_i32, %arg0 : i32, i32
  }
  func.func @transform_1(%arg0: i32) -> (i32, i32) {
    %c0_i32 = arith.constant 0 : i32
    %c0_i32_0 = arith.constant 0 : i32
    %c0_i32_1 = arith.constant 0 : i32
    return %c0_i32, %c0_i32_0 : i32, i32
  }
  func.func @transform_2(%arg0: i32) -> (i32, i32) {
    %c0_i32 = arith.constant 0 : i32
    %c0_i32_0 = arith.constant 0 : i32
    %c0_i32_1 = arith.constant 0 : i32
    return %c0_i32, %c0_i32_0 : i32, i32
  }
  func.func @transform_3(%arg0: i32) -> (i32, i32) {
    %c0_i32 = arith.constant 0 : i32
    %c0_i32_0 = arith.constant 0 : i32
    %c0_i32_1 = arith.constant 0 : i32
    return %c0_i32, %c0_i32_0 : i32, i32
  }
  func.func @transform_4(%arg0: i32) -> (i32, i32) {
    %c0_i32 = arith.constant 0 : i32
    %c0_i32_0 = arith.constant 0 : i32
    %c0_i32_1 = arith.constant 0 : i32
    return %c0_i32, %c0_i32_0 : i32, i32
  }
  func.func @transform_5(%arg0: i32) -> (i32, i32) {
    %c0_i32 = arith.constant 0 : i32
    %c0_i32_0 = arith.constant 0 : i32
    return %c0_i32, %arg0 : i32, i32
  }
}

</mosaic_0001>

<bundles_post_ra>
// kernel: tpu_custom_call.1
= control target key start
LH: loop header
LB: loop body
LE: loop exit
PB: predicated region body
PF: predicated region fallthrough
CT: control target
= control target key end

     0   :  { %s1001_s0 = inlined_call_operand.hbm [shape: f32[9,1024], index: 0, kind: input, shape index: {}]   ;;  %s1002_s1 = inlined_call_operand.vmem [shape: f32[10,9], index: 1, kind: input, shape index: {}]   ;;  %s1003_s2 = inlined_call_operand.vmem [shape: f32[10,1], index: 2, kind: input, shape index: {}]   ;;  %s1004_s3 = inlined_call_operand.vmem [shape: f32[1,10], index: 3, kind: input, shape index: {}]   ;;  %s1005_s4 = inlined_call_operand.<no memory space> [shape: f32[1,1], index: 4, kind: input, shape index: {}]   ;;  %s1006_s5 = inlined_call_operand.hbm [shape: f32[1,1024], index: 5, kind: output, shape index: {}]  }
   0x1   :  { %v10_v0 = vstv %s1005_s4 }
   0x2   :  { %11 = vst [vmem:[#allocation2] sm:$0x1] %v10_v0 }
   0x3   :  { %12 = vsyncpa [#allocation4], 0 }
   0x4   :  { %14 = vsyncpa [#allocation4 + $0x1], 0 }
   0x5   :  { %15 = vsyncpa [#allocation5], 0 }
   0x6   :  { %17 = vsyncpa [#allocation5 + $0x1], 0  ;;  %s823_s20 = smov 0   ;;  %s825_s21 = smov 0  }
   0x7   :  { %s827_s22 = smov 0   ;;  %s829_s23 = smov 0  }
   0x8 LB: > { %s844_s4 = sadd.s32 4294967295, %s779_s23   ;;  %s577_s24 = sadd.s32 4294967294, %s779_s23   ;;  %s779_s23 = sphi %s829_s23, %s1019_s23   ;;  %s775_s22 = sphi %s827_s22, %s1018_s22   ;;  %s771_s21 = sphi %s825_s21, %s1017_s21   ;;  %s767_s20 = sphi %s823_s20, %s1016_s20  }
   0x9   : > { %s848_s25 = sadd.s32 1, %s779_s23   ;;  %s30_s26 = sadd.s32 1, %s775_s22 }
   0xa   : > { %s27_s27 = ssub.s32 %s779_s23, %s848_s25  ;;  %p37_p0 = scmp.ne.s32.totalorder %s775_s22, %s771_s21 }
   0xb   : > { %p28_p1 = scmp.eq.s32.totalorder %s27_s27, 0  ;;  %p38_p2 = scmp.eq.s32.totalorder %s779_s23, 0 }
   0xc   : > { %p43_p3 = scmp.ne.s32.totalorder %s771_s21, %s767_s20  ;;  %p44_p4 = scmp.eq.s32.totalorder %s844_s4, 0 }
   0xd   : > { %s860_s28 = scalar_select %p28_p1, %s775_s22, %s30_s26  }
   0xe   : > { %p862_p5 = por %p38_p2, %p37_p0  ;;  %p866_p6 = por %p44_p4, %p43_p3 }
   0xf   : > { %p151_p7 = scmp.eq.s32.totalorder %s844_s4, 3  ;;  %p157_p8 = scmp.eq.s32.totalorder %s577_s24, 3 }
  0x10   : > { %p624_p9 = scmp.lt.s32.totalorder %s779_s23, 4  ;;  %s189_s8 = sand.u32 1, %s775_s22  }
  0x11   : > { %p872_p10 = por %p151_p7, %p37_p0  ;;  %p876_p11 = por %p157_p8, %p43_p3 }
  0x12   : > { %s598_s9 = sshll.u32 %s779_s23, 8  ;;  %s580_s10 = sshll.u32 %s189_s8, 5 }
  0x13   : > { %s1010_s6 = scalar_select %p872_p10, 1, 0 }
  0x14   : > { %s1011_s7 = scalar_select %p876_p11, 1, 0 }
  0x15   : > { %s885_s13 = scalar_lea.hbm %s1001_s0, %s598_s9  ;;  %s193_s14 = scalar_lea.vmem [#allocation3], %s580_s10 }
  0x16   : > { %s200_s15 = sshll.u32 %s193_s14, 4  ;;  %p889_p12 = pnand %p624_p9, %p862_p5  ;;  %s893_s15 = int_to_ptr.vmem [resolvable:$true] %s200_s15 }
  0x17   : > { %s896_s17 = scalar_lea.sflag [#allocation4], %s189_s8  ;;  %s683_s18 = scalar_lea.hbm %s885_s13, 512 }
  0x18   : > { %p684_p0 = scmp.ne.s32.totalorder %s885_s13, %s683_s18  ;;  %p685_p1 = pneg %p889_p12 }
  0x19   : > { %s688_s26 = scalar_lea.hbm %s1001_s0, 2048  ;;  %p689_p4 = scmp.lt.u32.totalorder %s885_s13, %s1001_s0 }
  0x1a   : > { %p686_p2 = pnand %p685_p1, %p684_p0  ;;  %p690_p5 = scmp.lt.u32.totalorder %s688_s26, %s683_s18 }
  0x1b   : > { %p692_p8 = scmp.lt.u32.totalorder %s683_s18, %s885_s13 }
  0x1c   : > { %p687_p3 = pneg %p686_p2  ;;  %p691_p7 = por %p690_p5, %p689_p4 }
  0x1e   : > { %p693_p9 = por %p692_p8, %p691_p7 }
  0x20   : > { %p694_p13 = pnand %p693_p9, %p687_p3 }
  0x22   : > { %697 = shalt.err (!%p694_p13)
}
  0x23   : > { %s698_s8 = scalar_lea.vmem %s893_s15, 512  ;;  %s781_s9 = smov [#allocation3]  }
  0x24   : > { %p699_p0 = scmp.ne.s32.totalorder %s893_s15, %s698_s8  ;;  %s703_s10 = sshll.u32 %s781_s9, 4  ;;  %s704_s10 = int_to_ptr.vmem [resolvable:$false] %s703_s10 }
  0x25   : > { %s705_s11 = scalar_lea.vmem %s704_s10, 1024  ;;  %p706_p10 = scmp.lt.s32.totalorder %s893_s15, %s704_s10 }
  0x26   : > { %p701_p2 = pnand %p699_p0, %p685_p1  ;;  %p707_p4 = scmp.lt.s32.totalorder %s705_s11, %s698_s8 }
  0x28   : > { %p702_p11 = pneg %p701_p2  ;;  %p708_p5 = por %p707_p4, %p706_p10 }
  0x2a   : > { %p709_p7 = pnand %p708_p5, %p702_p11 }
  0x2c   : > { %712 = shalt.err (!%p709_p7)
}
  0x2d   : > { %s782_s12 = smov 1024   ;;  %s783_s14 = smov 256  }
  0x2e   : > { %s784_s18 = smov 16   ;;  %p208_p13 = scmp.lt.s32.totalorder %s779_s23, 5 }
  0x2f   : > { %619 = dma.hbm_to_vmem [thread:$0]  (!%p889_p12), %s885_s13, 512, %s893_s15, %s896_s17, %s782_s12, %s783_s14, %s784_s18  }
  0x30   : > { %p1013_p1 = scmp.ge.s32.totalorder %s779_s23, 1 }
  0x32   : > { %p209_p3 = pnand %p1013_p1, %p208_p13 }
  0x33   : > { %s928_s19 = sand.u32 (!%p209_p3), 1, %s771_s21  }
  0x34   : > { %212 = sbr.rel (%p209_p3) target bundleno = 556 (0x22c), region = 40  ;;  %s584_s24 = sshll.u32 (!%p209_p3), %s928_s19, 5 }
  0x35   : > { %s215_s26 = scalar_lea.sflag (!%p209_p3), [#allocation4], %s928_s19  ;;  %s218_s27 = scalar_lea.vmem (!%p209_p3), [#allocation3], %s584_s24 }
  0x3b   : > { %758 = dma.done.wait (%p866_p6), %s215_s26, 512  }
  0x3c   : > { %760 = vsyncadd (%p866_p6), %s215_s26, 4294966784  ;;  %v785_v1 = vmov 0.0   ;;  %v786_v2 = vmov 0   ;;  %vm272_vm0 = vcmask 1040384   ;;  %vm787_vm1 = vmmov 1   ;;  %v248_v3 = vld [vmem:[%s218_s27 + $0x8] sm:$0xff] }
  0x3d   : > { %343 = vmatprep.mubr.f32.mxu0 %v785_v1  ;;  %462 = vmatprep.mubr.f32.mxu1 %v785_v1  ;;  %vm601_vm2 = vmpackc.low %vm272_vm0, %vm787_vm1  ;;  %v250_v4 = vld [vmem:[%s218_s27 + $0x18] sm:$0x1]  ;;  %v247_v5 = vld [vmem:[%s218_s27] sm:$0xff]  ;;  %vm265_vm3 = vcmask 72704   ;;  %vm391_vm4 = vcmask 1041408   ;;  %vm387_vm6 = vcmask 80896   ;;  %v383_v47 = vlaneseq }
  0x3e   : > { %665 = vset.pattern.permute.xlu0 %v786_v2  ;;  %666 = vset.pattern.permute.xlu1 %v786_v2  ;;  %v600_v6 = vpack.c.bf16 %v250_v4, %v248_v3  ;;  %v249_v7 = vld [vmem:[%s218_s27 + $0x10] sm:$0x1]  ;;  %v253_v9 = vld [vmem:[%s1003_s2] sm:$0xff]  ;;  %v254_v11 = vld [vmem:[%s1003_s2 + $0x8] sm:$0x3]  ;;  %s585_s12 = sshll.u32 %s928_s19, 1 }
  0x3f   : > { %v603_v8 = vpack.c.bf16 %v249_v7, %v247_v5  ;;  %257 = vperm.xlu0 %665, %v253_v9   ;;  %v251_v10 = vld [vmem:[%s1002_s1] sm:$0xff]  ;;  %v252_v12 = vld [vmem:[%s1002_s1 + $0x8] sm:$0x3]  ;;  %vm607_vm5 = vmpackc.low %vm391_vm4, %vm787_vm1  ;;  %v384_v48 = vshrl.u32 %v383_v47, 7  ;;  %v788_v51 = vmov 1966171168  }
  0x40   : > { %602 = vmatprep.subr.msk.bf16.mxu0 %vm601_vm2, %v600_v6  ;;  %v377_v13 = vld [vmem:[#allocation2] sm:$0x1]  ;;  %v473_v52 = vunpack.c.l.s4 %v788_v51  ;;  %s599_s14 = sshll.u32 %s844_s4, 5  ;;  %s244_s18 = scalar_lea.vmem [#allocation6], %s585_s12  ;;  %vm489_vm7 = vcmp.lt.s32.totalorder %v383_v47, 256 }
  0x41   : > { %605 = vmatpush1.bf16.msk.msra.mxu0 %vm601_vm2, %v603_v8  ;;  %380 = vperm.xlu1 %666, %v377_v13   ;;  %v376_v46 = vld [vmem:[%s1004_s3] sm:$0x1]  ;;  %v385_v49 = vsub.s32 0, %v384_v48  ;;  %s507_s24 = sshll.u32 %s244_s18, 4  ;;  %s958_s13 = scalar_lea.hbm %s1006_s5, %s599_s14  ;;  %s960_s24 = int_to_ptr.vmem [resolvable:$true] %s507_s24 }
  0x42   : > { %v474_v54 = vunpack.c.0.s8 %v473_v52  ;;  %s493_s15 = scalar_lea.sflag [#allocation5], %s928_s19  ;;  %s713_s30 = scalar_lea.vmem %s960_s24, 32 }
  0x43   : > { %262 = vperm.xlu0 %665, %v254_v11   ;;  %p714_p6 = scmp.ne.s32.totalorder %s960_s24, %s713_s30  ;;  %p1014_p10 = scmp.ne.s32.totalorder %s1010_s6, 0 }
  0x44   : > { %588 = vmatmul.mubr.msk.f32.vlgmr.msra.gmra.mrb[0].mxu0 %vm265_vm3, %v251_v10  ;;  %v477_v59 = vsub.s32 %v474_v54, %v384_v48  ;;  %s789_s4 = smov [#allocation6]  }
  0x45   : > { %349 = vmatprep.mubr.f32.mxu0 %v785_v1  ;;  %p715_p11 = pnand %p714_p6, %p1014_p10  ;;  %s717_s16 = sshll.u32 %s789_s4, 4  ;;  %s718_s16 = int_to_ptr.vmem [resolvable:$false] %s717_s16 }
  0x46   : > { %s719_s17 = scalar_lea.vmem %s718_s16, 64  ;;  %p720_p8 = scmp.lt.s32.totalorder %s960_s24, %s718_s16 }
  0x47   : > { %p716_p12 = pneg %p715_p11  ;;  %p721_p9 = scmp.lt.s32.totalorder %s719_s17, %s713_s30 }
  0x48   : > { %589 = vmatmul.mubr.msk.f32.gmra.mrb[2].mxu0 %vm265_vm3, %v252_v12 }
  0x49   : > { %p722_p0 = por %p721_p9, %p720_p8 }
  0x4b   : > { %p723_p2 = pnand %p722_p0, %p716_p12 }
  0xbe   : > { %v258_v14 = vpop.permute.xlu0 %257 }
  0xc0   : > { %v381_v50 = vpop.permute.xlu1 %380 }
  0xc1   : > { %v386_v53 = vrot.slane %v381_v50, %v385_v49 }
  0xc2   : > { %v263_v20 = vpop.permute.xlu0 %262 }
 0x117   : > { %v345_v15 = vpop.f32.mrb[0].mxu0 }
 0x118   : > { %v346_v16 = vadd.f32 %v345_v15, %v258_v14  ;;  %v347_v17 = vpop.f32.mrb[1].mxu0 }
 0x119   : > { %v348_v18 = vadd.f32 %v347_v17, %v258_v14 }
 0x11a   : > { %v356_v19 = vsub.f32 0.0, %v346_v16 }
 0x11b   : > { %v357_v21 = vsub.f32 0.0, %v348_v18  ;;  %v351_v22 = vpop.f32.mrb[2].mxu0 }
 0x11c   : > { %v360_v23 = vmul.f32 1.442695, %v356_v19  ;;  %v352_v24 = vadd.f32 %v351_v22, %v263_v20  ;;  %v353_v25 = vpop.f32.mrb[3].mxu0 }
 0x11d   : > { %v362_v26 = vmul.f32 1.442695, %v357_v21  ;;  %v354_v27 = vadd.f32 %v353_v25, %v263_v20 }
 0x11e   : > { %667 = vpow2.f32 %v360_v23  ;;  %v358_v28 = vsub.f32 0.0, %v352_v24 }
 0x11f   : > { %669 = vpow2.f32 %v362_v26  ;;  %v359_v29 = vsub.f32 0.0, %v354_v27 }
 0x120   : > { %v364_v30 = vmul.f32 1.442695, %v358_v28 }
 0x121   : > { %v366_v31 = vmul.f32 1.442695, %v359_v29 }
 0x122   : > { %671 = vpow2.f32 %v364_v30 }
 0x123   : > { %673 = vpow2.f32 %v366_v31 }
 0x128   : > { %v668_v32 = vpop.eup %667 }
 0x129   : > { %v670_v33 = vpop.eup %669  ;;  %v368_v34 = vadd.f32 1.0, %v668_v32 }
 0x12a   : > { %v369_v35 = vadd.f32 1.0, %v670_v33 }
 0x12b   : > { %675 = vrcp.f32 %v368_v34 }
 0x12c   : > { %v672_v36 = vpop.eup %671  ;;  %677 = vrcp.f32 %v369_v35 }
 0x12d   : > { %v674_v37 = vpop.eup %673  ;;  %v370_v38 = vadd.f32 1.0, %v672_v36 }
 0x12e   : > { %v371_v39 = vadd.f32 1.0, %v674_v37 }
 0x12f   : > { %679 = vrcp.f32 %v370_v38 }
 0x130   : > { %681 = vrcp.f32 %v371_v39 }
 0x135   : > { %v676_v40 = vpop.eup %675 }
 0x136   : > { %v678_v41 = vpop.eup %677 }
 0x139   : > { %v680_v42 = vpop.eup %679 }
 0x13a   : > { %v682_v43 = vpop.eup %681  ;;  %v609_v44 = vpack.c.bf16 %v680_v42, %v676_v40 }
 0x13b   : > { %v606_v45 = vpack.c.bf16 %v682_v43, %v678_v41 }
 0x13d   : > { %608 = vmatprep.subr.msk.bf16.mxu1 %vm607_vm5, %v606_v45 }
 0x13e   : > { %611 = vmatpush1.bf16.msk.msra.mxu1 %vm607_vm5, %v609_v44 }
 0x141   : > { %592 = vmatmul.mubr.msk.f32.vlgmr.msra.gmra.mrb[0].mxu1 %vm387_vm6, %v376_v46 }
 0x214   : > { %v464_v55 = vpop.f32.mrb[0].mxu1 }
 0x215   : > { %v465_v56 = vadd.f32 %v464_v55, %v386_v53  ;;  %v466_v57 = vpop.f32.mrb[1].mxu1 }
 0x216   : > { %v467_v58 = vadd.f32 %v466_v57, %v386_v53 }
 0x218   : > { %v471_v60 = vcombine.low %v465_v56, %v467_v58 }
 0x21a   : > { %v478_v61 = vrot.slane %v471_v60, %v477_v59 }
 0x21c   : > { %v485_v62 = vrot.slane %v478_v61, %v477_v59 }
 0x21e   : > { %491 = vst.msk [vmem:[%s244_s18] sm:$0x3] %vm489_vm7, %v485_v62 }
 0x21f   : > { %726 = shalt.err (!%p723_p2)
}
 0x220   : > { %s727_s19 = scalar_lea.hbm %s958_s13, 32  ;;  %s731_s9 = scalar_lea.hbm %s1006_s5, 128 }
 0x221   : > { %p728_p4 = scmp.ne.s32.totalorder %s958_s13, %s727_s19  ;;  %p732_p13 = scmp.lt.u32.totalorder %s958_s13, %s1006_s5 }
 0x222   : > { %p733_p1 = scmp.lt.u32.totalorder %s731_s9, %s727_s19  ;;  %p735_p6 = scmp.lt.u32.totalorder %s727_s19, %s958_s13 }
 0x223   : > { %p729_p5 = pnand %p728_p4, %p1014_p10 }
 0x224   : > { %p734_p3 = por %p733_p1, %p732_p13 }
 0x225   : > { %p730_p7 = pneg %p729_p5 }
 0x226   : > { %p736_p11 = por %p735_p6, %p734_p3 }
 0x228   : > { %p737_p12 = pnand %p736_p11, %p730_p7 }
 0x22a   : > { %740 = shalt.err (!%p737_p12)
}
 0x22b   : > { %614 = dma.vmem_to_hbm [thread:$0]  (%p1014_p10), %s960_s24, 32, %s958_s13, %s493_s15  }
 0x22c PF: > { %p625_p8 = scmp.ge.s32.totalorder %s779_s23, 2  ;;  %s519_s12 = sand.u32 1, %s767_s20  }
 0x22d   : > { %p1015_p9 = scmp.ne.s32.totalorder %s1011_s7, 0  ;;  %s520_s14 = scalar_lea.sflag [#allocation5], %s519_s12 }
 0x22f   : > { %p621_p0 = pnand %p625_p8, %p1015_p9 }
 0x231   : > { %762 = dma.done.wait (!%p621_p0), %s520_s14, 32  }
 0x232   : > { %764 = vsyncadd (!%p621_p0), %s520_s14, 4294967264  ;;  %p20_p2 = scmp.ge.s32.totalorder %s848_s25, 6   ;;  %s1016_s20 = smov %s771_s21 }
 0x233   : > { %s1017_s21 = smov %s775_s22  ;;  %s1018_s22 = smov %s860_s28 }
 0x234   : > { %s1019_s23 = smov %s848_s25  ;;  %22 = sbr.rel (!%p20_p2) target bundleno = 8 (0x8), region = 85 }
 0x23b   :  { %525 = vsyncpa [#allocation4], 1 }
 0x23c   :  { %527 = vsyncpa [#allocation4 + $0x1], 1 }
 0x23d   :  { %528 = vsyncpa [#allocation5], 1 }
 0x23e   :  { %530 = vsyncpa [#allocation5 + $0x1], 1 }

</bundles_post_ra>
